<compile_context>
chip_gen: v5e
topology: v5e:2x2
jax: 0.10.0
libtpu: 0.0.40
codegen_flags: <defaults>
</compile_context>

<pallas_src>
import numpy as np
import jax
import jax.numpy as jnp
from jax.experimental import pallas as pl
from jax.experimental.pallas import tpu as pltpu

L = 96          # sequence length == fc "channel" == LayerNorm normalized dim
HID = 2 * L     # hidden width of the squeeze/excite MLP (192)
TM_MAX = 512    # max rows (= b*c slices) per grid step; multiple of 8


def _dct_matrix(n):
    # DCT-II with norm=None, exactly matching the reference torch dct():
    #   X_k = 2 * sum_n x_n * cos(pi * (2n+1) * k / (2N))
    k = np.arange(n, dtype=np.float64)[:, None]
    m = np.arange(n, dtype=np.float64)[None, :]
    d = 2.0 * np.cos(np.pi * (2.0 * m + 1.0) * k / (2.0 * n))   # (k, n)
    return jnp.asarray(d.T, dtype=jnp.float32)                  # (n, k): freq = x @ Dt


def _round_up(x, m):
    return ((x + m - 1) // m) * m


def dct_block_kernel(x_ref, w1_ref, w2_ref, g_ref, b_ref, o_ref):
    x = x_ref[...].astype(jnp.float32)                                    # (TM, L)
    # Fused DCT + fc1: relu((x @ Dt) @ W1) == relu(x @ (Dt @ W1)) (exact algebra).
    # TODO(synk): Dropout(p=0.1) treated as identity (eval-mode); torch
    # training-mode RNG mask is not reproduced here.
    h = jnp.dot(x, w1_ref[...], preferred_element_type=jnp.float32)       # (TM, 2L)
    h = jnp.maximum(h, 0.0)
    # Linear(2L, L, bias=False) -> Sigmoid
    s = jax.nn.sigmoid(jnp.dot(h, w2_ref[...], preferred_element_type=jnp.float32))
    # LayerNorm([96], eps=1e-6) over the last dim (biased variance, like torch).
    mean = jnp.mean(s, axis=-1, keepdims=True)
    dev = s - mean
    var = jnp.mean(dev * dev, axis=-1, keepdims=True)
    ln = dev * jax.lax.rsqrt(var + 1e-6) * g_ref[...] + b_ref[...]
    # Channel/temporal gating: out = x * lr_weight
    o_ref[...] = (x * ln).astype(o_ref.dtype)


def dct_channel_block(x, w1, w2, gamma, beta, *, tm_max=TM_MAX):
    """x: (B, C, L); w1: (L, 2L); w2: (2L, L); gamma, beta: (L,)."""
    b, c, l = x.shape
    assert l == L, "LayerNorm([96]) in the module forces L == 96"
    rows = b * c
    # Row tile: as large as possible up to tm_max, always a multiple of 8.
    tm = min(tm_max, _round_up(rows, 8))
    grid = (pl.cdiv(rows, tm),)

    x2 = x.reshape(rows, l)

    # Fold the DCT basis into fc1 (exact linear-algebra refactor, done once).
    dctm = _dct_matrix(l)
    w1f = jnp.dot(dctm, w1.astype(jnp.float32),
                  precision=jax.lax.Precision.HIGHEST)          # (L, 2L)
    g2 = gamma.reshape(1, l).astype(jnp.float32)
    b2 = beta.reshape(1, l).astype(jnp.float32)

    out = pl.pallas_call(
        dct_block_kernel,
        out_shape=jax.ShapeDtypeStruct((rows, l), x.dtype),
        grid=grid,
        in_specs=[
            pl.BlockSpec((tm, l), lambda i: (i, 0)),      # x rows
            pl.BlockSpec((l, HID), lambda i: (0, 0)),     # fused DCT+fc1 weight
            pl.BlockSpec((HID, l), lambda i: (0, 0)),     # fc2 weight (in, out)
            pl.BlockSpec((1, l), lambda i: (0, 0)),       # LN gamma
            pl.BlockSpec((1, l), lambda i: (0, 0)),       # LN beta
        ],
        out_specs=pl.BlockSpec((tm, l), lambda i: (i, 0)),
        compiler_params=pltpu.CompilerParams(
            dimension_semantics=("parallel",)),
    )(x2, w1f, w2, g2, b2)

    return out.reshape(b, c, l)


def _reference(x, w1, w2, gamma, beta):
    # Pure-JAX reference of the torch forward (eval mode), unfused.
    dctm = _dct_matrix(x.shape[-1])
    freq = jnp.einsum('bcl,lk->bck', x.astype(jnp.float32), dctm)
    h = jnp.maximum(freq @ w1, 0.0)
    s = jax.nn.sigmoid(h @ w2)
    mean = jnp.mean(s, axis=-1, keepdims=True)
    var = jnp.mean((s - mean) ** 2, axis=-1, keepdims=True)
    ln = (s - mean) / jnp.sqrt(var + 1e-6) * gamma + beta
    return x * ln


if __name__ == "__main__":
    key = jax.random.PRNGKey(0)
    kx, k1, k2 = jax.random.split(key, 3)

    B, C = 2, 4
    x = jax.random.normal(kx, (B, C, L), dtype=jnp.float32)

    # Deterministic parameter init (PyTorch Linear default bound = 1/sqrt(fan_in)).
    bound1 = 1.0 / np.sqrt(L)
    bound2 = 1.0 / np.sqrt(HID)
    w1 = jax.random.uniform(k1, (L, HID), jnp.float32, -bound1, bound1)
    w2 = jax.random.uniform(k2, (HID, L), jnp.float32, -bound2, bound2)
    gamma = jnp.ones((L,), jnp.float32)   # nn.LayerNorm default affine init
    beta = jnp.zeros((L,), jnp.float32)

    out = dct_channel_block(x, w1, w2, gamma, beta)
    out = jax.block_until_ready(out)

    ref = _reference(x, w1, w2, gamma, beta)
    # Slight headroom over 1e-4: DCT-into-fc1 fusion reassociates fp32 matmuls.
    np.testing.assert_allclose(np.asarray(out), np.asarray(ref), rtol=2e-4, atol=2e-4)

    print("KERNEL_OK")
</pallas_src>

<mosaic_0001>
module attributes {stable_mosaic.version = 11 : i64} {
  func.func @dct_block_kernel(%arg0: i32, %arg1: memref<8x96xf32, #tpu.memory_space<vmem>>, %arg2: memref<96x192xf32, #tpu.memory_space<vmem>>, %arg3: memref<192x96xf32, #tpu.memory_space<vmem>>, %arg4: memref<1x96xf32, #tpu.memory_space<vmem>>, %arg5: memref<1x96xf32, #tpu.memory_space<vmem>>, %arg6: memref<8x96xf32, #tpu.memory_space<vmem>>) attributes {dimension_semantics = [#tpu.dimension_semantics<parallel>], iteration_bounds = array<i64: 1>, scalar_prefetch = 0 : i64, scratch_operands = 0 : i64, tpu.core_type = #tpu.core_type<tc>, window_params = [{transform_indices = @transform_0, window_bounds = array<i64: 8, 96>}, {pipeline_mode = #tpu.pipeline_mode<synchronous>, transform_indices = @transform_1, window_bounds = array<i64: 96, 192>}, {pipeline_mode = #tpu.pipeline_mode<synchronous>, transform_indices = @transform_2, window_bounds = array<i64: 192, 96>}, {pipeline_mode = #tpu.pipeline_mode<synchronous>, transform_indices = @transform_3, window_bounds = array<i64: 1, 96>}, {pipeline_mode = #tpu.pipeline_mode<synchronous>, transform_indices = @transform_4, window_bounds = array<i64: 1, 96>}, {transform_indices = @transform_5, window_bounds = array<i64: 8, 96>}]} {
    %c0 = arith.constant 0 : index
    %c0_0 = arith.constant 0 : index
    %0 = vector.load %arg1[%c0, %c0_0] : memref<8x96xf32, #tpu.memory_space<vmem>>, vector<8x96xf32>
    %c0_1 = arith.constant 0 : index
    %c0_2 = arith.constant 0 : index
    %1 = vector.load %arg2[%c0_1, %c0_2] : memref<96x192xf32, #tpu.memory_space<vmem>>, vector<96x192xf32>
    %cst = arith.constant dense<0.000000e+00> : vector<8x192xf32>
    %2 = tpu.matmul %0, %1, %cst {dimension_numbers = #tpu.dot_dimension_numbers<[1], [0], [0], [1], [0, 0, 1, 1], [], []>} : vector<8x96xf32>, vector<96x192xf32>, vector<8x192xf32> -> vector<8x192xf32>
    %cst_3 = arith.constant 0.000000e+00 : f32
    %3 = vector.broadcast %cst_3 : f32 to vector<8x192xf32>
    %4 = arith.maximumf %2, %3 : vector<8x192xf32>
    %c0_4 = arith.constant 0 : index
    %c0_5 = arith.constant 0 : index
    %5 = vector.load %arg3[%c0_4, %c0_5] : memref<192x96xf32, #tpu.memory_space<vmem>>, vector<192x96xf32>
    %cst_6 = arith.constant dense<0.000000e+00> : vector<8x96xf32>
    %6 = tpu.matmul %4, %5, %cst_6 {dimension_numbers = #tpu.dot_dimension_numbers<[1], [0], [0], [1], [0, 0, 1, 1], [], []>} : vector<8x192xf32>, vector<192x96xf32>, vector<8x96xf32> -> vector<8x96xf32>
    %7 = arith.negf %6 : vector<8x96xf32>
    %8 = math.exp %7 : vector<8x96xf32>
    %cst_7 = arith.constant 1.000000e+00 : f32
    %9 = vector.broadcast %cst_7 : f32 to vector<8x96xf32>
    %10 = arith.addf %9, %8 : vector<8x96xf32>
    %11 = arith.divf %9, %10 : vector<8x96xf32>
    %cst_8 = arith.constant dense<0.000000e+00> : vector<8xf32>
    %12 = vector.multi_reduction <add>, %11, %cst_8 [1] : vector<8x96xf32> to vector<8xf32>
    %13 = vector.shape_cast %12 : vector<8xf32> to vector<8x1xf32>
    %cst_9 = arith.constant 9.600000e+01 : f32
    %14 = vector.broadcast %cst_9 : f32 to vector<8x1xf32>
    %15 = arith.divf %13, %14 : vector<8x1xf32>
    %16 = vector.broadcast %15 : vector<8x1xf32> to vector<8x96xf32>
    %17 = arith.subf %11, %16 : vector<8x96xf32>
    %18 = arith.mulf %17, %17 : vector<8x96xf32>
    %cst_10 = arith.constant dense<0.000000e+00> : vector<8xf32>
    %19 = vector.multi_reduction <add>, %18, %cst_10 [1] : vector<8x96xf32> to vector<8xf32>
    %20 = vector.shape_cast %19 : vector<8xf32> to vector<8x1xf32>
    %cst_11 = arith.constant 9.600000e+01 : f32
    %21 = vector.broadcast %cst_11 : f32 to vector<8x1xf32>
    %22 = arith.divf %20, %21 : vector<8x1xf32>
    %cst_12 = arith.constant 9.99999997E-7 : f32
    %23 = vector.broadcast %cst_12 : f32 to vector<8x1xf32>
    %24 = arith.addf %22, %23 : vector<8x1xf32>
    %25 = math.rsqrt %24 : vector<8x1xf32>
    %26 = vector.broadcast %25 : vector<8x1xf32> to vector<8x96xf32>
    %27 = arith.mulf %17, %26 : vector<8x96xf32>
    %c0_13 = arith.constant 0 : index
    %c0_14 = arith.constant 0 : index
    %28 = vector.load %arg4[%c0_13, %c0_14] : memref<1x96xf32, #tpu.memory_space<vmem>>, vector<1x96xf32>
    %29 = vector.broadcast %28 : vector<1x96xf32> to vector<8x96xf32>
    %30 = arith.mulf %27, %29 : vector<8x96xf32>
    %c0_15 = arith.constant 0 : index
    %c0_16 = arith.constant 0 : index
    %31 = vector.load %arg5[%c0_15, %c0_16] : memref<1x96xf32, #tpu.memory_space<vmem>>, vector<1x96xf32>
    %32 = vector.broadcast %31 : vector<1x96xf32> to vector<8x96xf32>
    %33 = arith.addf %30, %32 : vector<8x96xf32>
    %34 = arith.mulf %0, %33 : vector<8x96xf32>
    %c0_17 = arith.constant 0 : index
    %c0_18 = arith.constant 0 : index
    %35 = vector.load %arg6[%c0_17, %c0_18] : memref<8x96xf32, #tpu.memory_space<vmem>>, vector<8x96xf32>
    tpu.vector_store %arg6[%c0_17, %c0_18], %34 {strides = array<i32>} : memref<8x96xf32, #tpu.memory_space<vmem>>, vector<8x96xf32>,
    return
  }
  func.func @transform_0(%arg0: i32) -> (i32, i32) {
    %c0_i32 = arith.constant 0 : i32
    %c0_i32_0 = arith.constant 0 : i32
    return %arg0, %c0_i32 : i32, i32
  }
  func.func @transform_1(%arg0: i32) -> (i32, i32) {
    %c0_i32 = arith.constant 0 : i32
    %c0_i32_0 = arith.constant 0 : i32
    %c0_i32_1 = arith.constant 0 : i32
    return %c0_i32, %c0_i32_0 : i32, i32
  }
  func.func @transform_2(%arg0: i32) -> (i32, i32) {
    %c0_i32 = arith.constant 0 : i32
    %c0_i32_0 = arith.constant 0 : i32
    %c0_i32_1 = arith.constant 0 : i32
    return %c0_i32, %c0_i32_0 : i32, i32
  }
  func.func @transform_3(%arg0: i32) -> (i32, i32) {
    %c0_i32 = arith.constant 0 : i32
    %c0_i32_0 = arith.constant 0 : i32
    %c0_i32_1 = arith.constant 0 : i32
    return %c0_i32, %c0_i32_0 : i32, i32
  }
  func.func @transform_4(%arg0: i32) -> (i32, i32) {
    %c0_i32 = arith.constant 0 : i32
    %c0_i32_0 = arith.constant 0 : i32
    %c0_i32_1 = arith.constant 0 : i32
    return %c0_i32, %c0_i32_0 : i32, i32
  }
  func.func @transform_5(%arg0: i32) -> (i32, i32) {
    %c0_i32 = arith.constant 0 : i32
    %c0_i32_0 = arith.constant 0 : i32
    return %arg0, %c0_i32 : i32, i32
  }
}

</mosaic_0001>

<bundles_post_ra>
// kernel: tpu_custom_call.1
= control target key start
LH: loop header
LB: loop body
LE: loop exit
PB: predicated region body
PF: predicated region fallthrough
CT: control target
= control target key end

     0   :  { %10 = vsyncpa [#allocation3], 0  ;;  %s475_s0 = inlined_call_operand.hbm [shape: f32[8,96], index: 0, kind: input, shape index: {}]   ;;  %s476_s1 = inlined_call_operand.hbm [shape: f32[96,192], index: 1, kind: input, shape index: {}]   ;;  %s477_s2 = inlined_call_operand.hbm [shape: f32[192,96], index: 2, kind: input, shape index: {}]   ;;  %s478_s3 = inlined_call_operand.vmem [shape: f32[1,96], index: 3, kind: input, shape index: {}]   ;;  %s479_s4 = inlined_call_operand.vmem [shape: f32[1,96], index: 4, kind: input, shape index: {}]   ;;  %s480_s5 = inlined_call_operand.hbm [shape: f32[8,96], index: 5, kind: output, shape index: {}]  }
   0x1   :  { %11 = vsyncpa [#allocation6], 0  ;;  %s28_s20 = sshll.u32 %s476_s1, 4  ;;  %s29_s20 = int_to_ptr.hbm [resolvable:$true] %s28_s20 }
   0x2   :  { %12 = vsyncpa [#allocation4], 0  ;;  %s408_s21 = smov [#allocation5]   ;;  %s18_s25 = sshll.u32 %s475_s0, 4  ;;  %s19_s25 = int_to_ptr.hbm [resolvable:$true] %s18_s25 }
   0x3   :  { %s30_s22 = sshll.u32 %s408_s21, 4  ;;  %s409_s26 = smov 256   ;;  %s31_s22 = int_to_ptr.vmem [resolvable:$true] %s30_s22 }
   0x4   :  { %s410_s27 = smov 16   ;;  %s411_s28 = smov [#allocation2]  }
   0x5   :  { %36 = dma.hbm_to_vmem [thread:$0]  %s29_s20, 3072, %s31_s22, [#allocation6], %s409_s26, %s409_s26, %s410_s27  }
   0x6   :  { %s20_s29 = sshll.u32 %s411_s28, 4  ;;  %s41_s7 = sshll.u32 %s477_s2, 4  ;;  %s21_s29 = int_to_ptr.vmem [resolvable:$true] %s20_s29  ;;  %s42_s7 = int_to_ptr.hbm [resolvable:$true] %s41_s7 }
   0x7   :  { %23 = dma.hbm_to_vmem [thread:$0]  %s19_s25, 128, %s21_s29, [#allocation3]  }
   0x8   :  { %s412_s1 = smov [#allocation7]   ;;  %s413_s9 = smov 128  }
   0x9   :  { %s43_s8 = sshll.u32 %s412_s1, 4  ;;  %s414_s10 = smov 8   ;;  %s44_s8 = int_to_ptr.vmem [resolvable:$true] %s43_s8 }
   0xa   :  { %49 = dma.hbm_to_vmem [thread:$0]  %s42_s7, 3072, %s44_s8, [#allocation6], %s413_s9, %s413_s9, %s414_s10  }
   0xb   :  { %402 = dma.done.wait [#allocation3], 128  }
   0xc   :  { %403 = vsyncadd [#allocation3], 4294967168 }
   0xd   :  { %404 = dma.done.wait [#allocation6], 6144  }
   0xe   :  { %405 = vsyncadd [#allocation6], 4294961152  ;;  %v89_v0 = vld [vmem:[#allocation5 + $0xb0] sm:$0xff]  ;;  %v90_v1 = vld [vmem:[#allocation5 + $0xb8] sm:$0xff]  ;;  %vm91_vm0 = vcmask 785408   ;;  %vm161_vm1 = vcmask 523264  }
   0xf   :  { %v87_v2 = vld [vmem:[#allocation5 + $0xa0] sm:$0xff]  ;;  %99 = vmatpush.msra.mxu0 %v89_v0  ;;  %119 = vmatpush.msra.mxu1 %v90_v1  ;;  %v88_v3 = vld [vmem:[#allocation5 + $0xa8] sm:$0xff]  ;;  %v85_v4 = vld [vmem:[#allocation5 + $0x90] sm:$0xff]  ;;  %s416_s13 = smov [#allocation8]   ;;  %s272_s17 = sshll.u32 %s480_s5, 4  ;;  %s273_s17 = int_to_ptr.hbm [resolvable:$true] %s272_s17 }
  0x10   :  { %v86_v5 = vld [vmem:[#allocation5 + $0x98] sm:$0xff]  ;;  %v83_v6 = vld [vmem:[#allocation5 + $0x80] sm:$0xff]  ;;  %v84_v7 = vld [vmem:[#allocation5 + $0x88] sm:$0xff]  ;;  %s270_s14 = sshll.u32 %s416_s13, 4  ;;  %s271_s14 = int_to_ptr.vmem [resolvable:$true] %s270_s14 }
  0x11   :  { %100 = vmatpush.msra.mxu0 %v87_v2  ;;  %120 = vmatpush.msra.mxu1 %v88_v3  ;;  %v81_v8 = vld [vmem:[#allocation5 + $0x70] sm:$0xff]  ;;  %v82_v9 = vld [vmem:[#allocation5 + $0x78] sm:$0xff]  ;;  %v79_v10 = vld [vmem:[#allocation5 + $0x60] sm:$0xff] }
  0x12   :  { %v80_v11 = vld [vmem:[#allocation5 + $0x68] sm:$0xff]  ;;  %v152_v12 = vld [vmem:[#allocation7 + $0x78] sm:$0xff]  ;;  %v151_v13 = vld [vmem:[#allocation7 + $0x70] sm:$0xff] }
  0x13   :  { %101 = vmatpush.msra.mxu0 %v85_v4  ;;  %121 = vmatpush.msra.mxu1 %v86_v5  ;;  %v77_v14 = vld [vmem:[#allocation5 + $0x50] sm:$0xff]  ;;  %v78_v15 = vld [vmem:[#allocation5 + $0x58] sm:$0xff]  ;;  %v150_v16 = vld [vmem:[#allocation7 + $0x68] sm:$0xff] }
  0x14   :  { %165 = vmatpush.msra.mxu2 %v152_v12  ;;  %v160_v17 = vld [vmem:[#allocation7 + $0xb8] sm:$0xff]  ;;  %v75_v18 = vld [vmem:[#allocation5 + $0x40] sm:$0xff]  ;;  %v76_v19 = vld [vmem:[#allocation5 + $0x48] sm:$0xff] }
  0x15   :  { %102 = vmatpush.msra.mxu0 %v83_v6  ;;  %122 = vmatpush.msra.mxu1 %v84_v7  ;;  %v159_v20 = vld [vmem:[#allocation7 + $0xb0] sm:$0xff]  ;;  %v149_v21 = vld [vmem:[#allocation7 + $0x60] sm:$0xff]  ;;  %v158_v22 = vld [vmem:[#allocation7 + $0xa8] sm:$0xff]  ;;  %v415_v6 = vmov 96.0  }
  0x16   :  { %166 = vmatpush.msra.mxu2 %v151_v13  ;;  %193 = vmatpush.msra.mxu3 %v160_v17  ;;  %v73_v23 = vld [vmem:[#allocation5 + $0x30] sm:$0xff]  ;;  %v74_v24 = vld [vmem:[#allocation5 + $0x38] sm:$0xff]  ;;  %v157_v26 = vld [vmem:[#allocation7 + $0xa0] sm:$0xff] }
  0x17   :  { %103 = vmatpush.msra.mxu0 %v81_v8  ;;  %123 = vmatpush.msra.mxu1 %v82_v9  ;;  %v148_v25 = vld [vmem:[#allocation7 + $0x58] sm:$0xff]  ;;  %v71_v27 = vld [vmem:[#allocation5 + $0x20] sm:$0xff]  ;;  %v72_v28 = vld [vmem:[#allocation5 + $0x28] sm:$0xff] }
  0x18   :  { %167 = vmatpush.msra.mxu2 %v150_v16  ;;  %194 = vmatpush.msra.mxu3 %v159_v20  ;;  %v147_v29 = vld [vmem:[#allocation7 + $0x50] sm:$0xff]  ;;  %v156_v30 = vld [vmem:[#allocation7 + $0x98] sm:$0xff]  ;;  %v146_v33 = vld [vmem:[#allocation7 + $0x48] sm:$0xff] }
  0x19   :  { %104 = vmatpush.msra.mxu0 %v79_v10  ;;  %124 = vmatpush.msra.mxu1 %v80_v11  ;;  %v69_v31 = vld [vmem:[#allocation5 + $0x10] sm:$0xff]  ;;  %v70_v32 = vld [vmem:[#allocation5 + $0x18] sm:$0xff]  ;;  %v67_v35 = vld [vmem:[#allocation5] sm:$0xff] }
  0x1a   :  { %168 = vmatpush.msra.mxu2 %v149_v21  ;;  %195 = vmatpush.msra.mxu3 %v158_v22  ;;  %v155_v34 = vld [vmem:[#allocation7 + $0x90] sm:$0xff]  ;;  %v68_v36 = vld [vmem:[#allocation5 + $0x8] sm:$0xff]  ;;  %v456_v37 = vld [vmem:[#allocation2] sm:$0xff] }
  0x1b   :  { %105 = vmatpush.msra.mxu0 %v77_v14  ;;  %125 = vmatpush.msra.mxu1 %v78_v15  ;;  %v145_v38 = vld [vmem:[#allocation7 + $0x40] sm:$0xff]  ;;  %v144_v39 = vld [vmem:[#allocation7 + $0x38] sm:$0xff]  ;;  %v143_v40 = vld [vmem:[#allocation7 + $0x30] sm:$0xff] }
  0x1c   :  { %169 = vmatpush.msra.mxu2 %v148_v25  ;;  %196 = vmatpush.msra.mxu3 %v157_v26  ;;  %v142_v41 = vld [vmem:[#allocation7 + $0x28] sm:$0xff]  ;;  %v141_v42 = vld [vmem:[#allocation7 + $0x20] sm:$0xff]  ;;  %v140_v43 = vld [vmem:[#allocation7 + $0x18] sm:$0xff] }
  0x1d   :  { %106 = vmatpush.msra.mxu0 %v75_v18  ;;  %126 = vmatpush.msra.mxu1 %v76_v19  ;;  %v139_v44 = vld [vmem:[#allocation7 + $0x10] sm:$0xff]  ;;  %v138_v45 = vld [vmem:[#allocation7 + $0x8] sm:$0xff]  ;;  %v137_v47 = vld [vmem:[#allocation7] sm:$0xff] }
  0x1e   :  { %170 = vmatpush.msra.mxu2 %v147_v29  ;;  %197 = vmatpush.msra.mxu3 %v156_v30  ;;  %v154_v46 = vld [vmem:[#allocation7 + $0x88] sm:$0xff]  ;;  %v153_v48 = vld [vmem:[#allocation7 + $0x80] sm:$0xff]  ;;  %v297_v30 = vld [vmem:[%s479_s4] ss:$0 sm:$0xff] }
  0x1f   :  { %107 = vmatpush.msra.mxu0 %v73_v23  ;;  %127 = vmatpush.msra.mxu1 %v74_v24 }
  0x20   :  { %171 = vmatpush.msra.mxu2 %v146_v33  ;;  %198 = vmatpush.msra.mxu3 %v155_v34 }
  0x21   :  { %108 = vmatpush.msra.mxu0 %v71_v27  ;;  %128 = vmatpush.msra.mxu1 %v72_v28  ;;  %v296_v27 = vld [vmem:[%s478_s3] ss:$0 sm:$0xff] }
  0x22   :  { %172 = vmatpush.msra.mxu2 %v145_v38  ;;  %199 = vmatpush.msra.mxu3 %v154_v46 }
  0x23   :  { %109 = vmatpush.msra.mxu0 %v69_v31  ;;  %129 = vmatpush.msra.mxu1 %v70_v32 }
  0x24   :  { %173 = vmatpush.msra.mxu2 %v144_v39  ;;  %200 = vmatpush.msra.mxu3 %v153_v48 }
  0x25   :  { %110 = vmatpush.msra.mxu0 %v67_v35  ;;  %130 = vmatpush.msra.mxu1 %v68_v36 }
  0x26   :  { %283 = vmatmul.msk.f32.vlgmr.msra.gmra.mxu0 %vm91_vm0, %v456_v37  ;;  %284 = vmatmul.msk.f32.vlgmr.msra.gmra.mxu1 %vm91_vm0, %v456_v37 }
  0x27   :  { %174 = vmatpush.msra.mxu2 %v143_v40 }
  0x29   :  { %175 = vmatpush.msra.mxu2 %v142_v41 }
  0x2b   :  { %176 = vmatpush.msra.mxu2 %v141_v42 }
  0x2d   :  { %177 = vmatpush.msra.mxu2 %v140_v43 }
  0x2f   :  { %178 = vmatpush.msra.mxu2 %v139_v44 }
  0x31   :  { %179 = vmatpush.msra.mxu2 %v138_v45 }
  0x33   :  { %180 = vmatpush.msra.mxu2 %v137_v47 }
  0xa3   :  { %v112_v49 = vpop.f32.mrf.mxu0  ;;  %v132_v50 = vpop.f32.mrf.mxu1 }
  0xa4   :  { %v135_v51 = vmax.f32 %v112_v49, 0.0  ;;  %v136_v52 = vmax.f32 %v132_v50, 0.0 }
  0xa6   :  { %181 = vmatmul.f32.vlgmr.msra.gmra.mxu2 %v135_v51  ;;  %285 = vmatmul.msk.f32.vlgmr.msra.gmra.mxu3 %vm161_vm1, %v136_v52 }
 0x129   :  { %v182_v53 = vpop.f32.mrf.mxu2  ;;  %v202_v54 = vpop.f32.mrf.mxu3 }
 0x12a   :  { %v203_v55 = vadd.f32 %v202_v54, %v182_v53 }
 0x12c   :  { %v286_v56 = vmul.f32 -1.442695, %v203_v55 }
 0x12e   :  { %298 = vpow2.f32 %v286_v56 }
 0x134   :  { %v299_v57 = vpop.eup %298 }
 0x135   :  { %v208_v58 = vadd.f32 1.0, %v299_v57 }
 0x137   :  { %300 = vrcp.f32 %v208_v58  ;;  %v220_v62 = vand.u32 2147483648, %v208_v58  ;;  %v218_v0 = vand.u32 2147483647, %v208_v58  ;;  %vm214_vm3 = vweird.f32 %v208_v58 }
 0x138   :  { %302 = vrcp.f32 %v415_v6 }
 0x139   :  { %v221_v2 = vor.u32 1.1754944e-38, %v220_v62  ;;  %vm219_vm5 = vcmp.eq.f32.partialorder %v218_v0, 8.507059e+37 }
 0x13d   :  { %v301_v59 = vpop.eup %300 }
 0x13e   :  { %v210_v60 = vmul.f32 %v301_v59, %v208_v58  ;;  %vm215_vm2 = vweird.f32 %v301_v59  ;;  %v303_v7 = vpop.eup %302 }
 0x13f   :  { %vm216_vm4 = vmor %vm214_vm3, %vm215_vm2  ;;  %v228_v8 = vmul.f32 96.0, %v303_v7  ;;  %vm232_vm6 = vweird.f32 %v303_v7 }
 0x140   :  { %v211_v61 = vsub.f32 1.0, %v210_v60 }
 0x141   :  { %v229_v9 = vsub.f32 1.0, %v228_v8 }
 0x142   :  { %v212_v63 = vmul.f32 %v301_v59, %v211_v61 }
 0x143   :  { %v230_v10 = vmul.f32 %v303_v7, %v229_v9 }
 0x144   :  { %v213_v1 = vadd.f32 %v301_v59, %v212_v63 }
 0x145   :  { %v231_v11 = vadd.f32 %v303_v7, %v230_v10 }
 0x146   :  { %v217_v3 = vsel %vm216_vm4, %v301_v59, %v213_v1 }
 0x147   :  { %v222_v4 = vsel %vm219_vm5, %v221_v2, %v217_v3  ;;  %v233_v12 = vsel %vm232_vm6, %v303_v7, %v231_v11 }
 0x148   :  { %v224_v5 = vsel %vm91_vm0, %v222_v4, 0.0 }
 0x149   :  { %225 = vadd.xlane.f32.xlu0 %v224_v5 }
 0x1bc   :  { %v226_v13 = vpop.xlane.xlu0 %225 }
 0x1bd   :  { %v234_v14 = vmul.f32 %v233_v12, %v226_v13 }
 0x1bf   :  { %v235_v15 = vsub.f32 %v222_v4, %v234_v14 }
 0x1c1   :  { %v236_v16 = vmul.f32 %v235_v15, %v235_v15 }
 0x1c3   :  { %v237_v17 = vsel %vm91_vm0, %v236_v16, 0.0 }
 0x1c4   :  { %238 = vadd.xlane.f32.xlu0 %v237_v17 }
 0x237   :  { %v239_v18 = vpop.xlane.xlu0 %238 }
 0x238   :  { %v240_v19 = vmul.f32 %v239_v18, %v233_v12 }
 0x23a   :  { %v241_v20 = vadd.f32 1e-06, %v240_v19 }
 0x23c   :  { %304 = vrsqrt.f32 %v241_v20  ;;  %vm248_vm8 = vweird.f32 %v241_v20 }
 0x242   :  { %v305_v21 = vpop.eup %304 }
 0x243   :  { %v243_v22 = vmul.f32 %v305_v21, %v241_v20  ;;  %vm249_vm7 = vweird.f32 %v305_v21 }
 0x244   :  { %vm250_vm9 = vmor %vm248_vm8, %vm249_vm7 }
 0x245   :  { %v244_v23 = vmul.f32 %v305_v21, %v243_v22 }
 0x247   :  { %v245_v24 = vmul.f32 0.5, %v244_v23 }
 0x249   :  { %v246_v25 = vsub.f32 1.5, %v245_v24 }
 0x24b   :  { %v247_v26 = vmul.f32 %v305_v21, %v246_v25 }
 0x24d   :  { %v251_v28 = vsel %vm250_vm9, %v305_v21, %v247_v26 }
 0x24e   :  { %v252_v29 = vmul.f32 %v251_v28, %v235_v15 }
 0x250   :  { %v257_v31 = vmul.f32 %v296_v27, %v252_v29 }
 0x252   :  { %v262_v32 = vadd.f32 %v297_v30, %v257_v31 }
 0x254   :  { %v263_v33 = vmul.f32 %v262_v32, %v456_v37 }
 0x256   :  { %264 = vst.msk [vmem:[#allocation8] sm:$0xff] %vm91_vm0, %v263_v33 }
 0x257   :  { %275 = dma.vmem_to_hbm [thread:$0]  %s271_s14, 128, %s273_s17, [#allocation4]  }
 0x258   :  { %406 = dma.done.wait [#allocation4], 128  }
 0x259   :  { %407 = vsyncadd [#allocation4], 4294967168 }
 0x25a   :  { %280 = vsyncpa [#allocation3], 1 }
 0x25b   :  { %281 = vsyncpa [#allocation6], 1 }
 0x25c   :  { %282 = vsyncpa [#allocation4], 1 }

</bundles_post_ra>
